<compile_context>
chip_gen: v7x
topology: tpu7x:2x2x1
jax: 0.10.0
libtpu: 0.0.40
codegen_flags: <defaults>
</compile_context>

<pallas_src>
import jax
import jax.numpy as jnp
from jax.experimental import pallas as pl
from jax.experimental.pallas import tpu as pltpu


def att_sum_kernel(x_ref, out_ref):
    """out[b, :] += sum_t feature_tile[b, t, :]   (attention weights == 1.0)."""
    # Output block is resident across the T ("arbitrary") grid axis: zero it on
    # the first reduction step, accumulate afterwards.
    @pl.when(pl.program_id(1) == 0)
    def _init():
        out_ref[...] = jnp.zeros_like(out_ref)

    # (TB, TT, H) -> (TB, H): sublane reduction over the T tile (mem-bound).
    out_ref[...] += jnp.sum(x_ref[...], axis=1).astype(out_ref.dtype)


def _pick_tiles(B, T, H, itemsize, block_budget_bytes=32 << 20):
    """Choose (tb, tt) batch / reduction-axis tile sizes.

    Legality: the (tb, H) output block needs tb % 8 == 0 or tb == B; the
    (tb, tt, H) input block needs tt % 8 == 0 or tt == T (H is always the full
    lane dim).  The fit check accounts for everything actually resident:
    double-buffered input tile + double-buffered output block.
    """
    tb_cands = [tb for tb in range(1, B + 1)
                if B % tb == 0 and (tb % 8 == 0 or tb == B)]
    tt_cands = [tt for tt in range(1, T + 1)
                if T % tt == 0 and (tt % 8 == 0 or tt == T)]

    def block_bytes(tb, tt):
        return 2 * tb * tt * H * itemsize + 2 * tb * H * itemsize

    # Prefer T untiled (single pass over the reduction axis) with the biggest
    # batch tile that fits: fewest grid steps, biggest DMAs.
    fits_full_t = [tb for tb in tb_cands if block_bytes(tb, T) <= block_budget_bytes]
    if fits_full_t:
        return max(fits_full_t), T

    # Otherwise use the smallest legal batch tile and tile T as well,
    # accumulating in the resident output block.
    tb = min(tb_cands)
    fits_t = [tt for tt in tt_cands if block_bytes(tb, tt) <= block_budget_bytes]
    tt = max(fits_t) if fits_t else min(tt_cands)  # best effort if nothing fits
    return tb, tt


def att_forward(feature, w1=None, b1=None, w2=None, b2=None):
    """Forward pass of the PyTorch ATT module.

    feature: (B, T, H).  w1/b1/w2/b2 (the attention-MLP parameters) are
    accepted for drop-in compatibility but — faithfully to the PyTorch code as
    written — cannot affect the output: softmax over the permuted size-1 axis
    makes every attention weight exactly 1.0, so the result is the T-axis sum.
    """
    del w1, b1, w2, b2  # mathematically dead (see module-level comment)

    B, T, H = feature.shape
    itemsize = feature.dtype.itemsize
    tb, tt = _pick_tiles(B, T, H, itemsize)
    grid = (B // tb, T // tt)

    # Deeper input pipelining only pays when there are many small tiles
    # (small tiles alone reach well under the HBM roofline).
    n_steps = grid[0] * grid[1]
    tile_bytes = tb * tt * H * itemsize
    if n_steps >= 4 and tile_bytes <= (2 << 20):
        feat_spec = pl.BlockSpec((tb, tt, H), lambda b, t: (b, t, 0),
                                 pipeline_mode=pl.Buffered(3))
    else:
        feat_spec = pl.BlockSpec((tb, tt, H), lambda b, t: (b, t, 0))

    out = pl.pallas_call(
        att_sum_kernel,
        out_shape=jax.ShapeDtypeStruct((B, H), feature.dtype),
        grid_spec=pltpu.PrefetchScalarGridSpec(
            num_scalar_prefetch=0,
            grid=grid,
            in_specs=[feat_spec],
            # Same output block across the T axis -> resident accumulator.
            out_specs=pl.BlockSpec((tb, H), lambda b, t: (b, 0)),
        ),
        compiler_params=pltpu.CompilerParams(
            dimension_semantics=("parallel", "arbitrary"),
            vmem_limit_bytes=48 << 20,   # above v5e's 16 MiB default, within v7x's 64 MiB
        ),
    )(feature)

    # torch `.squeeze()` on the (B, 1, H) bmm result removes *all* singleton
    # dims: (B, H) normally, (H,) when B == 1, (B,) when H == 1.
    return jnp.squeeze(out.reshape(B, 1, H))


def att_reference(feature, w1, b1, w2, b2):
    """Pure-JAX reference mirroring the full PyTorch forward (dropout = identity)."""
    h = jnp.maximum(feature @ w1 + b1, 0.0)                 # Linear -> ReLU
    att = jax.nn.sigmoid(h @ w2 + b2)                       # Linear -> Sigmoid, (B, T, 1)
    att = jnp.transpose(att, (0, 2, 1))                     # (B, 1, T)
    att = jax.nn.softmax(att, axis=1)                       # softmax over the size-1 dim
    out = jnp.einsum("bot,bth->boh", att, feature)          # bmm, (B, 1, H)
    return jnp.squeeze(out)                                 # torch .squeeze()


if __name__ == "__main__":
    B, T, H = 2, 8, 32  # small (batch, seq, hidden) shapes for the demo

    key = jax.random.PRNGKey(0)
    k_x, k_w1, k_b1, k_w2, k_b2 = jax.random.split(key, 5)

    feature = jax.random.normal(k_x, (B, T, H), dtype=jnp.float32)
    # Deterministic synthetic parameters matching nn.Linear shapes, stored
    # (in, out) so the reference computes x @ W + b.
    w1 = jax.random.normal(k_w1, (H, H), dtype=jnp.float32) * 0.1
    b1 = jax.random.normal(k_b1, (1, H), dtype=jnp.float32) * 0.1
    w2 = jax.random.normal(k_w2, (H, 1), dtype=jnp.float32) * 0.1
    b2 = jax.random.normal(k_b2, (1, 1), dtype=jnp.float32) * 0.1

    out = att_forward(feature, w1, b1, w2, b2)
    out = jax.block_until_ready(out)

    ref = att_reference(feature, w1, b1, w2, b2)
    assert out.shape == ref.shape, (out.shape, ref.shape)
    assert jnp.allclose(out, ref, atol=1e-5, rtol=1e-5), "mismatch vs reference"

    print("KERNEL_OK")
</pallas_src>

<mosaic_0001>
module attributes {stable_mosaic.version = 11 : i64} {
  func.func @att_sum_kernel(%arg0: i32, %arg1: i32, %arg2: memref<2x8x32xf32, #tpu.memory_space<vmem>>, %arg3: memref<2x32xf32, #tpu.memory_space<vmem>>) attributes {dimension_semantics = [#tpu.dimension_semantics<parallel>, #tpu.dimension_semantics<arbitrary>], iteration_bounds = array<i64: 1, 1>, scalar_prefetch = 0 : i64, scratch_operands = 0 : i64, tpu.core_type = #tpu.core_type<tc>, window_params = [{transform_indices = @transform_0, window_bounds = array<i64: 2, 8, 32>}, {transform_indices = @transform_1, window_bounds = array<i64: 2, 32>}]} {
    %c0_i32 = arith.constant 0 : i32
    %0 = arith.cmpi eq, %arg1, %c0_i32 : i32
    %1 = arith.extui %0 : i1 to i32
    %c0_i32_0 = arith.constant 0 : i32
    %2 = arith.cmpi ne, %1, %c0_i32_0 : i32
    scf.if %2 {
      %cst_7 = arith.constant 0.000000e+00 : f32
      %8 = vector.broadcast %cst_7 : f32 to vector<2x32xf32>
      %c0_8 = arith.constant 0 : index
      %c0_9 = arith.constant 0 : index
      %9 = vector.load %arg3[%c0_8, %c0_9] : memref<2x32xf32, #tpu.memory_space<vmem>>, vector<2x32xf32>
      tpu.vector_store %arg3[%c0_8, %c0_9], %8 {strides = array<i32>} : memref<2x32xf32, #tpu.memory_space<vmem>>, vector<2x32xf32>,
    } else {
    }
    %c0 = arith.constant 0 : index
    %c0_1 = arith.constant 0 : index
    %3 = vector.load %arg3[%c0, %c0_1] : memref<2x32xf32, #tpu.memory_space<vmem>>, vector<2x32xf32>
    %c0_2 = arith.constant 0 : index
    %c0_3 = arith.constant 0 : index
    %c0_4 = arith.constant 0 : index
    %4 = vector.load %arg2[%c0_2, %c0_3, %c0_4] : memref<2x8x32xf32, #tpu.memory_space<vmem>>, vector<2x8x32xf32>
    %cst = arith.constant dense<0.000000e+00> : vector<2x32xf32>
    %5 = vector.multi_reduction <add>, %4, %cst [1] : vector<2x8x32xf32> to vector<2x32xf32>
    %6 = arith.addf %3, %5 : vector<2x32xf32>
    %c0_5 = arith.constant 0 : index
    %c0_6 = arith.constant 0 : index
    %7 = vector.load %arg3[%c0_5, %c0_6] : memref<2x32xf32, #tpu.memory_space<vmem>>, vector<2x32xf32>
    tpu.vector_store %arg3[%c0_5, %c0_6], %6 {strides = array<i32>} : memref<2x32xf32, #tpu.memory_space<vmem>>, vector<2x32xf32>,
    return
  }
  func.func @transform_0(%arg0: i32, %arg1: i32) -> (i32, i32, i32) {
    %c0_i32 = arith.constant 0 : i32
    %c0_i32_0 = arith.constant 0 : i32
    return %arg0, %arg1, %c0_i32 : i32, i32, i32
  }
  func.func @transform_1(%arg0: i32, %arg1: i32) -> (i32, i32) {
    %c0_i32 = arith.constant 0 : i32
    %c0_i32_0 = arith.constant 0 : i32
    return %arg0, %c0_i32 : i32, i32
  }
}

</mosaic_0001>

<bundles_post_ra>
// kernel: tpu_custom_call.1
= control target key start
LH: loop header
LB: loop body
LE: loop exit
PB: predicated region body
PF: predicated region fallthrough
CT: control target
= control target key end

     0   :  { %6 = vsyncpa [#allocation3], 0  ;;  %s164_s0 = inlined_call_operand.hbm [shape: f32[2,8,32], index: 0, kind: input, shape index: {}]   ;;  %s165_s1 = inlined_call_operand.hbm [shape: f32[2,32], index: 1, kind: output, shape index: {}]  }
   0x1   :  { %7 = vsyncpa [#allocation4], 0  ;;  %s123_s6 = smov [#allocation2]   ;;  %s75_s10 = scalar_lea.hbm %s164_s0, 256 }
   0x2   :  { %s13_s7 = sshll.u32 %s123_s6, 4  ;;  %p76_p0 = scmp.ne.s32.totalorder %s164_s0, %s75_s10  ;;  %s14_s7 = int_to_ptr.vmem [resolvable:$true] %s13_s7 }
   0x3   :  { %p79_p1 = scmp.lt.u32.totalorder %s75_s10, %s164_s0 }
   0x5   :  { %p81_p2 = pnand %p79_p1, %p76_p0 }
   0x7   :  { %84 = shalt.err (!%p81_p2)
}
   0x8   :  { %s85_s15 = scalar_lea.vmem %s14_s7, 256  ;;  %p90_p4 = scmp.lt.s32.totalorder %s14_s7, %s14_s7 }
   0x9   :  { %p86_p3 = scmp.ne.s32.totalorder %s14_s7, %s85_s15  ;;  %p91_p5 = scmp.lt.s32.totalorder %s85_s15, %s85_s15 }
   0xb   :  { %p92_p6 = por %p91_p5, %p90_p4 }
   0xd   :  { %p93_p7 = pnand %p92_p6, %p86_p3 }
   0xf   :  { %96 = shalt.err (!%p93_p7)
}
  0x10   :  { %s124_s16 = smov 128   ;;  %s125_s17 = smov 8  }
  0x11   :  { %19 = dma.hbm_to_vmem [thread:$0]  %s164_s0, 256, %s14_s7, [#allocation3], %s124_s16, %s124_s16, %s125_s17  }
  0x12   :  { %119 = dma.done.wait [#allocation3], 256  }
  0x13   :  { %120 = vsyncadd [#allocation3], 4294967040  ;;  %vm27_vm0 = vcmask 254976   ;;  %v126_v0 = vmov 0.0   ;;  %vm32_vm1 = vcmask 261120   ;;  %v30_v1 = vld [vmem:[#allocation2] sm:$0xff] }
  0x14   :  { %28 = vst.msk [vmem:[#allocation5] sm:$0x3] %vm27_vm0, %v126_v0  ;;  %v31_v2 = vld [vmem:[#allocation2 + $0x8] sm:$0xff]  ;;  %v33_v3 = vsel %vm32_vm1, %v30_v1, 0.0  ;;  %vm49_vm2 = vcmask 1041409   ;;  %s127_s0 = smov [#allocation5]  }
  0x15   :  { %v40_v4 = vsel %vm32_vm1, %v31_v2, 0.0  ;;  %v34_v5 = vrot.slane %v33_v3, 4  ;;  %s61_s20 = sshll.u32 %s127_s0, 4  ;;  %s62_s20 = int_to_ptr.vmem [resolvable:$true] %s61_s20 }
  0x16   :  { %v41_v6 = vrot.slane %v40_v4, 4  ;;  %s97_s21 = scalar_lea.vmem %s62_s20, 32  ;;  %p102_p9 = scmp.lt.s32.totalorder %s62_s20, %s62_s20 }
  0x17   :  { %v35_v7 = vadd.f32 %v34_v5, %v33_v3  ;;  %p98_p8 = scmp.ne.s32.totalorder %s62_s20, %s97_s21  ;;  %p103_p10 = scmp.lt.s32.totalorder %s97_s21, %s97_s21 }
  0x18   :  { %v42_v8 = vadd.f32 %v41_v6, %v40_v4 }
  0x19   :  { %v36_v9 = vrot.slane %v35_v7, 2  ;;  %p104_p11 = por %p103_p10, %p102_p9 }
  0x1a   :  { %v43_v10 = vrot.slane %v42_v8, 2 }
  0x1b   :  { %v37_v11 = vadd.f32 %v36_v9, %v35_v7  ;;  %v29_v15 = vld [vmem:[#allocation5] sm:$0x3]  ;;  %p105_p12 = pnand %p104_p11, %p98_p8 }
  0x1c   :  { %v44_v12 = vadd.f32 %v43_v10, %v42_v8 }
  0x1d   :  { %v38_v13 = vrot.slane %v37_v11, 1 }
  0x1e   :  { %v45_v14 = vrot.slane %v44_v12, 1 }
  0x1f   :  { %v39_v16 = vadd.f32 %v38_v13, %v37_v11 }
  0x20   :  { %v46_v17 = vadd.f32 %v45_v14, %v44_v12 }
  0x22   :  { %v50_v18 = vsel %vm49_vm2, %v46_v17, %v39_v16 }
  0x23   :  { %v52_v19 = vadd.f32 %v50_v18, %v29_v15 }
  0x25   :  { %54 = vst.msk [vmem:[#allocation5] sm:$0x3] %vm27_vm0, %v52_v19 }
  0x26   :  { %108 = shalt.err (!%p105_p12)
}
  0x27   :  { %s109_s24 = scalar_lea.hbm %s165_s1, 32 }
  0x28   :  { %p110_p13 = scmp.ne.s32.totalorder %s165_s1, %s109_s24  ;;  %p113_p0 = scmp.lt.u32.totalorder %s109_s24, %s165_s1 }
  0x2a   :  { %p115_p1 = pnand %p113_p0, %p110_p13 }
  0x2c   :  { %118 = shalt.err (!%p115_p1)
}
  0x2d   :  { %64 = dma.vmem_to_hbm [thread:$0]  %s62_s20, 32, %s165_s1, [#allocation4]  }
  0x2e   :  { %121 = dma.done.wait [#allocation4], 32  }
  0x2f   :  { %122 = vsyncadd [#allocation4], 4294967264 }
  0x30   :  { %68 = vsyncpa [#allocation3], 1 }
  0x31   :  { %69 = vsyncpa [#allocation4], 1 }

</bundles_post_ra>
